<compile_context>
chip_gen: v7x
topology: tpu7x:2x2x1
jax: 0.10.0
libtpu: 0.0.40
codegen_flags: <defaults>
</compile_context>

<pallas_src>
import math

import jax
import jax.numpy as jnp
from jax.experimental import pallas as pl
from jax.experimental.pallas import tpu as pltpu


def dgi_decoder_kernel(seq_ref, adj_ref, w_ref, bgcn3_ref, bw_ref,
                       alpha_ref, bbias_ref, out_ref):
    bb, N, n_in3 = seq_ref.shape
    n_h3 = w_ref.shape[1]
    n_h = n_h3 // 3

    alpha = alpha_ref[0]          # PReLU slope (SMEM scalar)
    bbias = bbias_ref[0]          # Bilinear bias (SMEM scalar)

    w = w_ref[...]                # (3*n_in, 3*n_h) block-diagonal, compute dtype
    bias3 = bgcn3_ref[...]        # (1, 3*n_h)  f32  (GCN bias tiled x3)
    bw = bw_ref[...]              # (n_h, n_h)  f32
    adj = adj_ref[...]            # (bb, N, N)  compute dtype

    # --- fused GCN projection: one (bb*N, 3*n_in) @ (3*n_in, 3*n_h) matmul ---
    # The block-diagonal weight directly yields [fts1 | fts2 | fts3] along the
    # lane dim -- no in-kernel concatenation / relayout needed.
    seq2d = seq_ref[...].reshape(bb * N, n_in3)
    fts2d = jnp.dot(seq2d, w, preferred_element_type=jnp.float32)   # (bb*N, 3*n_h) f32
    fts = fts2d.reshape(bb, N, n_h3).astype(adj.dtype)              # cast once

    # --- fused propagation: adj @ [fts1 | fts2 | fts3]  (lane dim = 3*n_h) ---
    pre = jnp.einsum("bij,bjk->bik", adj, fts,
                     preferred_element_type=jnp.float32) + bias3    # (bb, N, 3*n_h)

    # PReLU (single shared parameter), applied once on the fused tile.
    act = jnp.where(pre > 0, pre, alpha * pre)

    h1 = act[..., 0:n_h]                                            # (bb, N, n_h)
    h23 = (act[..., n_h:2 * n_h] + act[..., 2 * n_h:3 * n_h]) * 0.5

    # AvgReadout (msk=None) -> mean over nodes, then sigmoid.
    c = jax.nn.sigmoid(jnp.mean(h1, axis=1))                        # (bb, n_h) f32

    # Bilinear discriminator vector on the MXU: v = c @ BW^T.
    v = jax.lax.dot_general(c, bw, (((1,), (1,)), ((), ())),
                            preferred_element_type=jnp.float32)     # (bb, n_h)

    # sc[b,n] = sum_i h[b,n,i] * v[b,i]  -> lane-dense (bb, N) rows
    sc1 = jnp.sum(h1 * v[:, None, :], axis=-1) + bbias              # (bb, N)
    sc2 = jnp.sum(h23 * v[:, None, :], axis=-1) + bbias             # (bb, N)

    # Lane-aligned output: each half starts at lane 0 (no offset-N store).
    out_ref[:, 0, :] = sc1
    out_ref[:, 1, :] = sc2


def _vmem_limit_bytes():
    """Generation-aware VMEM limit with headroom.

    ~48 MiB on 64 MiB parts (v7x), up to 96 MiB on 128 MiB parts (v5e/v6e).
    """
    cap = None
    try:
        info = pltpu.get_tpu_info()
        cap = getattr(info, "vmem_capacity_bytes", None)
    except Exception:
        cap = None
    if not cap:
        cap = 64 * 1024 * 1024          # conservative fallback (v7x-sized)
    return int(min(96 * 1024 * 1024, (cap * 3) // 4))


def _pick_batch_block(B, N, n_in, n_h, in_itemsize, vmem_limit):
    """Largest divisor of B fitting the VMEM budget, keeping enough grid steps."""
    # Per-batch-element per-grid-step footprint, including f32 temporaries.
    per_batch = 2 * in_itemsize * (N * 3 * n_in + N * N)    # seq_cat + adj, 2 bufs
    per_batch += 4 * (N * 3 * n_h) * 2                      # fts2d f32 + pre/act f32
    per_batch += in_itemsize * (N * 3 * n_h)                # fts cast to compute dtype
    per_batch += 4 * (2 * N * n_h)                          # h1 / h23 f32
    per_batch += 2 * 4 * (2 * N)                            # output, 2 bufs
    fixed = (2 * in_itemsize * (3 * n_in * 3 * n_h)         # block-diag weight, 2 bufs
             + 4 * (3 * n_h + n_h * n_h))                   # bias3 + BW f32
    budget = max(vmem_limit - fixed - (4 << 20), 1)         # 4 MiB headroom
    cap = max(1, budget // max(per_batch, 1))

    # Keep >= 4 grid steps when possible (v7x megacore balance + pipeline
    # overlap); >= 2 steps for small B.
    if B >= 4:
        cap = max(1, min(cap, B // 4))
    elif B >= 2:
        cap = max(1, min(cap, B // 2))

    best = 1
    best_even = None
    for d in range(1, B + 1):
        if B % d == 0 and d <= cap:
            best = d
            if (B // d) % 2 == 0:
                best_even = d               # prefer an even number of steps
    return best_even if best_even is not None else best


def dgi_decoder_forward(seq1, seq2, seq3, adj, params, *,
                        compute_dtype=jnp.bfloat16, batch_block=None):
    B, N, n_in = seq1.shape
    n_h = params["w_gcn"].shape[1]
    itemsize = jnp.dtype(compute_dtype).itemsize

    # Block-diagonal GCN weight: (3*n_in, 3*n_h), so one matmul produces the
    # fused [fts1 | fts2 | fts3] lane layout directly inside the kernel.
    w = params["w_gcn"].astype(jnp.float32)
    z = jnp.zeros_like(w)
    w_bd = jnp.block([[w, z, z], [z, w, z], [z, z, w]]).astype(compute_dtype)

    bgcn3 = jnp.tile(params["b_gcn"].reshape(1, n_h).astype(jnp.float32), (1, 3))
    alpha = params["alpha"].reshape(1).astype(jnp.float32)          # SMEM scalar
    bw = params["bw"].astype(jnp.float32)                           # (n_h, n_h)
    bbias = params["bb"].reshape(1).astype(jnp.float32)             # SMEM scalar

    # Pre-stack the three views along the feature axis (one HBM input).
    seq_cat = jnp.concatenate([seq1, seq2, seq3], axis=-1).astype(compute_dtype)
    adj_c = adj.astype(compute_dtype)

    vmem_limit = _vmem_limit_bytes()
    if batch_block is None:
        batch_block = _pick_batch_block(B, N, n_in, n_h, itemsize, vmem_limit)
    bb = batch_block
    assert B % bb == 0, (B, bb)
    grid = (B // bb,)

    flops = (2 * B * N * (3 * n_in) * (3 * n_h)   # fused projection (block-diag)
             + 2 * B * N * N * 3 * n_h            # fused adj matmul
             + 2 * B * n_h * n_h                  # bilinear v
             + 2 * B * 2 * N * n_h)               # scores
    bytes_accessed = ((B * N * 3 * n_in + B * N * N + 3 * n_in * 3 * n_h) * itemsize
                      + (3 * n_h + n_h * n_h + 2) * 4
                      + B * 2 * N * 4)
    cost = pl.CostEstimate(flops=flops, transcendentals=B * n_h,
                           bytes_accessed=bytes_accessed)

    out = pl.pallas_call(
        dgi_decoder_kernel,
        out_shape=jax.ShapeDtypeStruct((B, 2, N), jnp.float32),
        grid=grid,
        in_specs=[
            pl.BlockSpec((bb, N, 3 * n_in), lambda b: (b, 0, 0)),   # seq1|seq2|seq3
            pl.BlockSpec((bb, N, N), lambda b: (b, 0, 0)),          # adj
            pl.BlockSpec((3 * n_in, 3 * n_h), lambda b: (0, 0)),    # block-diag GCN W
            pl.BlockSpec((1, 3 * n_h), lambda b: (0, 0)),           # GCN bias (x3)
            pl.BlockSpec((n_h, n_h), lambda b: (0, 0)),             # Bilinear weight
            pl.BlockSpec((1,), lambda b: (0,),
                         memory_space=pltpu.MemorySpace.SMEM),      # PReLU alpha
            pl.BlockSpec((1,), lambda b: (0,),
                         memory_space=pltpu.MemorySpace.SMEM),      # Bilinear bias
        ],
        out_specs=pl.BlockSpec((bb, 2, N), lambda b: (b, 0, 0)),
        compiler_params=pltpu.CompilerParams(
            dimension_semantics=("parallel",),
            vmem_limit_bytes=vmem_limit),
        cost_estimate=cost,
    )(seq_cat, adj_c, w_bd, bgcn3, bw, alpha, bbias)

    return out.reshape(B, 2 * N)                 # [sc1 | sc2] along axis 1


def reference_forward(seq1, seq2, seq3, adj, params):
    """Pure-JAX reference mirroring the PyTorch module (dense, msk=None)."""
    w = params["w_gcn"]
    bgcn = params["b_gcn"]
    alpha = params["alpha"][0]
    bw = params["bw"]
    bb = params["bb"][0]

    def gcn(s):
        fts = s @ w
        out = jnp.einsum("bij,bjk->bik", adj, fts) + bgcn
        return jnp.where(out > 0, out, alpha * out)

    h1 = gcn(seq1)
    h2 = gcn(seq2)
    h3 = gcn(seq3)
    h23 = (h2 + h3) / 2
    c = jax.nn.sigmoid(jnp.mean(h1, axis=1))                 # (B, n_h)
    v = c @ bw.T                                             # (B, n_h)
    sc1 = jnp.einsum("bni,bi->bn", h1, v) + bb
    sc2 = jnp.einsum("bni,bi->bn", h23, v) + bb
    return jnp.concatenate([sc1, sc2], axis=1)


def init_params(key, n_in, n_h):
    k1, k2 = jax.random.split(key)
    # GCN Linear(n_in -> n_h, bias=False), xavier_uniform; stored transposed.
    bound_g = math.sqrt(6.0 / (n_in + n_h))
    w_gcn = jax.random.uniform(k1, (n_in, n_h), jnp.float32, -bound_g, bound_g)
    # GCN extra bias parameter, filled with 0.
    b_gcn = jnp.zeros((n_h,), jnp.float32)
    # PReLU slope (default 0.25, single shared parameter).
    alpha = jnp.full((1,), 0.25, jnp.float32)
    # Bilinear(n_h, n_h, 1) weight, xavier_uniform; output dim squeezed.
    bound_b = math.sqrt(6.0 / (n_h * n_h + n_h))
    bw = jax.random.uniform(k2, (n_h, n_h), jnp.float32, -bound_b, bound_b)
    bb = jnp.zeros((1,), jnp.float32)
    return {"w_gcn": w_gcn, "b_gcn": b_gcn, "alpha": alpha, "bw": bw, "bb": bb}


if __name__ == "__main__":
    B, N, n_in, n_h = 2, 16, 8, 32
    # de_size / gcn1 only feed the `embed()` method, not forward().
    # TODO(synk): sparse=True (torch.spmm) path and msk!=None readout not exercised.

    key = jax.random.PRNGKey(0)
    kp, k1, k2, k3, ka = jax.random.split(key, 5)
    params = init_params(kp, n_in, n_h)

    seq1 = jax.random.normal(k1, (B, N, n_in), jnp.float32)
    seq2 = jax.random.normal(k2, (B, N, n_in), jnp.float32)
    seq3 = jax.random.normal(k3, (B, N, n_in), jnp.float32)
    adj_raw = jax.random.uniform(ka, (B, N, N), jnp.float32)
    adj = adj_raw / jnp.sum(adj_raw, axis=-1, keepdims=True)   # row-normalized adjacency

    ref = reference_forward(seq1, seq2, seq3, adj, params)

    # f32 path: exact-semantics check against the pure-JAX reference.
    logits_f32 = dgi_decoder_forward(seq1, seq2, seq3, adj, params,
                                     compute_dtype=jnp.float32)
    logits_f32 = jax.block_until_ready(logits_f32)
    assert logits_f32.shape == (B, 2 * N), logits_f32.shape
    assert jnp.allclose(logits_f32, ref, atol=1e-5, rtol=1e-5), (
        float(jnp.max(jnp.abs(logits_f32 - ref))))

    # bf16 path (default): bf16 inputs on the DMA/MXU path, f32 accumulation +
    # f32 elementwise; loose tolerance for the cast.
    logits_bf16 = dgi_decoder_forward(seq1, seq2, seq3, adj, params)
    logits_bf16 = jax.block_until_ready(logits_bf16)
    assert logits_bf16.shape == (B, 2 * N), logits_bf16.shape
    assert jnp.allclose(logits_bf16, ref, atol=1e-1, rtol=1e-1), (
        float(jnp.max(jnp.abs(logits_bf16 - ref))))

    print("KERNEL_OK")
</pallas_src>

<mosaic_0001>
module attributes {stable_mosaic.version = 11 : i64} {
  func.func @dgi_decoder_kernel(%arg0: i32, %arg1: memref<1x16x24xf32, #tpu.memory_space<vmem>>, %arg2: memref<1x16x16xf32, #tpu.memory_space<vmem>>, %arg3: memref<24x96xf32, #tpu.memory_space<vmem>>, %arg4: memref<1x96xf32, #tpu.memory_space<vmem>>, %arg5: memref<32x32xf32, #tpu.memory_space<vmem>>, %arg6: memref<1xf32, #tpu.memory_space<smem>>, %arg7: memref<1xf32, #tpu.memory_space<smem>>, %arg8: memref<1x2x16xf32, #tpu.memory_space<vmem>>) attributes {dimension_semantics = [#tpu.dimension_semantics<parallel>], iteration_bounds = array<i64: 2>, scalar_prefetch = 0 : i64, scratch_operands = 0 : i64, tpu.core_type = #tpu.core_type<tc>, window_params = [{transform_indices = @transform_0, window_bounds = array<i64: 1, 16, 24>}, {transform_indices = @transform_1, window_bounds = array<i64: 1, 16, 16>}, {pipeline_mode = #tpu.pipeline_mode<synchronous>, transform_indices = @transform_2, window_bounds = array<i64: 24, 96>}, {pipeline_mode = #tpu.pipeline_mode<synchronous>, transform_indices = @transform_3, window_bounds = array<i64: 1, 96>}, {pipeline_mode = #tpu.pipeline_mode<synchronous>, transform_indices = @transform_4, window_bounds = array<i64: 32, 32>}, {transform_indices = @transform_5, window_bounds = array<i64: 1>}, {transform_indices = @transform_6, window_bounds = array<i64: 1>}, {transform_indices = @transform_7, window_bounds = array<i64: 1, 2, 16>}]} {
    %c0 = arith.constant 0 : index
    %0 = memref.load %arg6[%c0] : memref<1xf32, #tpu.memory_space<smem>>
    %c0_0 = arith.constant 0 : index
    %1 = memref.load %arg7[%c0_0] : memref<1xf32, #tpu.memory_space<smem>>
    %c0_1 = arith.constant 0 : index
    %c0_2 = arith.constant 0 : index
    %2 = vector.load %arg3[%c0_1, %c0_2] : memref<24x96xf32, #tpu.memory_space<vmem>>, vector<24x96xf32>
    %c0_3 = arith.constant 0 : index
    %c0_4 = arith.constant 0 : index
    %3 = vector.load %arg4[%c0_3, %c0_4] : memref<1x96xf32, #tpu.memory_space<vmem>>, vector<1x96xf32>
    %c0_5 = arith.constant 0 : index
    %c0_6 = arith.constant 0 : index
    %4 = vector.load %arg5[%c0_5, %c0_6] : memref<32x32xf32, #tpu.memory_space<vmem>>, vector<32x32xf32>
    %c0_7 = arith.constant 0 : index
    %c0_8 = arith.constant 0 : index
    %c0_9 = arith.constant 0 : index
    %5 = vector.load %arg2[%c0_7, %c0_8, %c0_9] : memref<1x16x16xf32, #tpu.memory_space<vmem>>, vector<1x16x16xf32>
    %c0_10 = arith.constant 0 : index
    %c0_11 = arith.constant 0 : index
    %c0_12 = arith.constant 0 : index
    %6 = vector.load %arg1[%c0_10, %c0_11, %c0_12] : memref<1x16x24xf32, #tpu.memory_space<vmem>>, vector<1x16x24xf32>
    %7 = vector.shape_cast %6 : vector<1x16x24xf32> to vector<16x24xf32>
    %cst = arith.constant dense<0.000000e+00> : vector<16x96xf32>
    %8 = tpu.matmul %7, %2, %cst {dimension_numbers = #tpu.dot_dimension_numbers<[1], [0], [0], [1], [0, 0, 1, 1], [], []>} : vector<16x24xf32>, vector<24x96xf32>, vector<16x96xf32> -> vector<16x96xf32>
    %9 = vector.shape_cast %8 : vector<16x96xf32> to vector<1x16x96xf32>
    "tpu.trace_start"() <{level = 10 : i32, message = "bij,bjk->bik"}> : () -> ()
    %cst_13 = arith.constant dense<0.000000e+00> : vector<1x16x96xf32>
    %10 = tpu.matmul %5, %9, %cst_13 {dimension_numbers = #tpu.dot_dimension_numbers<[2], [1], [1], [2], [0, 0, 0, 1, 1, 2], [0], [0]>} : vector<1x16x16xf32>, vector<1x16x96xf32>, vector<1x16x96xf32> -> vector<1x16x96xf32>
    "tpu.trace_stop"() : () -> ()
    %11 = vector.shape_cast %3 : vector<1x96xf32> to vector<1x1x96xf32>
    %12 = vector.broadcast %11 : vector<1x1x96xf32> to vector<1x16x96xf32>
    %13 = arith.addf %10, %12 : vector<1x16x96xf32>
    %cst_14 = arith.constant 0.000000e+00 : f32
    %14 = vector.broadcast %cst_14 : f32 to vector<1x16x96xf32>
    %15 = arith.cmpf ogt, %13, %14 : vector<1x16x96xf32>
    %16 = vector.broadcast %0 : f32 to vector<1x16x96xf32>
    %17 = arith.mulf %16, %13 : vector<1x16x96xf32>
    %18 = arith.select %15, %13, %17 : vector<1x16x96xi1>, vector<1x16x96xf32>
    %19 = vector.extract_strided_slice %18 {offsets = [0, 0, 0], sizes = [1, 16, 32], strides = [1, 1, 1]} : vector<1x16x96xf32> to vector<1x16x32xf32>
    %20 = vector.extract_strided_slice %18 {offsets = [0, 0, 32], sizes = [1, 16, 32], strides = [1, 1, 1]} : vector<1x16x96xf32> to vector<1x16x32xf32>
    %21 = vector.extract_strided_slice %18 {offsets = [0, 0, 64], sizes = [1, 16, 32], strides = [1, 1, 1]} : vector<1x16x96xf32> to vector<1x16x32xf32>
    %22 = arith.addf %20, %21 : vector<1x16x32xf32>
    %cst_15 = arith.constant 5.000000e-01 : f32
    %23 = vector.broadcast %cst_15 : f32 to vector<1x16x32xf32>
    %24 = arith.mulf %22, %23 : vector<1x16x32xf32>
    %cst_16 = arith.constant dense<0.000000e+00> : vector<1x32xf32>
    %25 = vector.multi_reduction <add>, %19, %cst_16 [1] : vector<1x16x32xf32> to vector<1x32xf32>
    %cst_17 = arith.constant 1.600000e+01 : f32
    %26 = vector.broadcast %cst_17 : f32 to vector<1x32xf32>
    %27 = arith.divf %25, %26 : vector<1x32xf32>
    %28 = arith.negf %27 : vector<1x32xf32>
    %29 = math.exp %28 : vector<1x32xf32>
    %cst_18 = arith.constant 1.000000e+00 : f32
    %30 = vector.broadcast %cst_18 : f32 to vector<1x32xf32>
    %31 = arith.addf %30, %29 : vector<1x32xf32>
    %32 = arith.divf %30, %31 : vector<1x32xf32>
    %cst_19 = arith.constant dense<0.000000e+00> : vector<1x32xf32>
    %33 = tpu.matmul %32, %4, %cst_19 {dimension_numbers = #tpu.dot_dimension_numbers<[1], [1], [0], [0], [0, 0, 1, 0], [], []>} : vector<1x32xf32>, vector<32x32xf32>, vector<1x32xf32> -> vector<1x32xf32>
    %34 = vector.shape_cast %33 : vector<1x32xf32> to vector<1x1x32xf32>
    %35 = vector.broadcast %34 : vector<1x1x32xf32> to vector<1x16x32xf32>
    %36 = arith.mulf %19, %35 : vector<1x16x32xf32>
    %cst_20 = arith.constant dense<0.000000e+00> : vector<1x16xf32>
    %37 = vector.multi_reduction <add>, %36, %cst_20 [2] : vector<1x16x32xf32> to vector<1x16xf32>
    %38 = vector.broadcast %1 : f32 to vector<1x16xf32>
    %39 = arith.addf %37, %38 : vector<1x16xf32>
    %40 = vector.shape_cast %33 : vector<1x32xf32> to vector<1x1x32xf32>
    %41 = vector.broadcast %40 : vector<1x1x32xf32> to vector<1x16x32xf32>
    %42 = arith.mulf %24, %41 : vector<1x16x32xf32>
    %cst_21 = arith.constant dense<0.000000e+00> : vector<1x16xf32>
    %43 = vector.multi_reduction <add>, %42, %cst_21 [2] : vector<1x16x32xf32> to vector<1x16xf32>
    %44 = vector.broadcast %1 : f32 to vector<1x16xf32>
    %45 = arith.addf %43, %44 : vector<1x16xf32>
    %c0_22 = arith.constant 0 : index
    %c0_23 = arith.constant 0 : index
    %c0_24 = arith.constant 0 : index
    %46 = vector.load %arg8[%c0_22, %c0_23, %c0_24] : memref<1x2x16xf32, #tpu.memory_space<vmem>>, vector<1x1x16xf32>
    %47 = vector.shape_cast %46 : vector<1x1x16xf32> to vector<1x16xf32>
    %48 = vector.shape_cast %39 : vector<1x16xf32> to vector<1x1x16xf32>
    tpu.vector_store %arg8[%c0_22, %c0_23, %c0_24], %48 {strides = array<i32>} : memref<1x2x16xf32, #tpu.memory_space<vmem>>, vector<1x1x16xf32>,
    %c0_25 = arith.constant 0 : index
    %c1 = arith.constant 1 : index
    %c0_26 = arith.constant 0 : index
    %49 = vector.load %arg8[%c0_25, %c1, %c0_26] : memref<1x2x16xf32, #tpu.memory_space<vmem>>, vector<1x1x16xf32>
    %50 = vector.shape_cast %49 : vector<1x1x16xf32> to vector<1x16xf32>
    %51 = vector.shape_cast %45 : vector<1x16xf32> to vector<1x1x16xf32>
    tpu.vector_store %arg8[%c0_25, %c1, %c0_26], %51 {strides = array<i32>} : memref<1x2x16xf32, #tpu.memory_space<vmem>>, vector<1x1x16xf32>,
    return
  }
  func.func @transform_0(%arg0: i32) -> (i32, i32, i32) {
    %c0_i32 = arith.constant 0 : i32
    %c0_i32_0 = arith.constant 0 : i32
    %c0_i32_1 = arith.constant 0 : i32
    return %arg0, %c0_i32, %c0_i32_0 : i32, i32, i32
  }
  func.func @transform_1(%arg0: i32) -> (i32, i32, i32) {
    %c0_i32 = arith.constant 0 : i32
    %c0_i32_0 = arith.constant 0 : i32
    %c0_i32_1 = arith.constant 0 : i32
    return %arg0, %c0_i32, %c0_i32_0 : i32, i32, i32
  }
  func.func @transform_2(%arg0: i32) -> (i32, i32) {
    %c0_i32 = arith.constant 0 : i32
    %c0_i32_0 = arith.constant 0 : i32
    %c0_i32_1 = arith.constant 0 : i32
    return %c0_i32, %c0_i32_0 : i32, i32
  }
  func.func @transform_3(%arg0: i32) -> (i32, i32) {
    %c0_i32 = arith.constant 0 : i32
    %c0_i32_0 = arith.constant 0 : i32
    %c0_i32_1 = arith.constant 0 : i32
    return %c0_i32, %c0_i32_0 : i32, i32
  }
  func.func @transform_4(%arg0: i32) -> (i32, i32) {
    %c0_i32 = arith.constant 0 : i32
    %c0_i32_0 = arith.constant 0 : i32
    %c0_i32_1 = arith.constant 0 : i32
    return %c0_i32, %c0_i32_0 : i32, i32
  }
  func.func @transform_5(%arg0: i32) -> i32 {
    %c0_i32 = arith.constant 0 : i32
    %c0_i32_0 = arith.constant 0 : i32
    return %c0_i32 : i32
  }
  func.func @transform_6(%arg0: i32) -> i32 {
    %c0_i32 = arith.constant 0 : i32
    %c0_i32_0 = arith.constant 0 : i32
    return %c0_i32 : i32
  }
  func.func @transform_7(%arg0: i32) -> (i32, i32, i32) {
    %c0_i32 = arith.constant 0 : i32
    %c0_i32_0 = arith.constant 0 : i32
    %c0_i32_1 = arith.constant 0 : i32
    return %arg0, %c0_i32, %c0_i32_0 : i32, i32, i32
  }
}

</mosaic_0001>

<bundles_post_ra>
// kernel: tpu_custom_call.1
= control target key start
LH: loop header
LB: loop body
LE: loop exit
PB: predicated region body
PF: predicated region fallthrough
CT: control target
= control target key end

     0   :  { %s1605_s0 = inlined_call_operand.hbm [shape: f32[2,16,24], index: 0, kind: input, shape index: {}]   ;;  %s1606_s1 = inlined_call_operand.hbm [shape: f32[2,16,16], index: 1, kind: input, shape index: {}]   ;;  %s1607_s2 = inlined_call_operand.hbm [shape: f32[24,96], index: 2, kind: input, shape index: {}]   ;;  %s1608_s3 = inlined_call_operand.vmem [shape: f32[1,96], index: 3, kind: input, shape index: {}]   ;;  %s1609_s4 = inlined_call_operand.hbm [shape: f32[32,32], index: 4, kind: input, shape index: {}]   ;;  %s1610_s5 = inlined_call_operand.<no memory space> [shape: f32[1], index: 5, kind: input, shape index: {}]   ;;  %s1611_s6 = inlined_call_operand.<no memory space> [shape: f32[1], index: 6, kind: input, shape index: {}]   ;;  %s1612_s7 = inlined_call_operand.hbm [shape: f32[2,2,16], index: 7, kind: output, shape index: {}]  }
   0x1   :  { %1620 = sst [smem:[#allocation18_spill]] %s1605_s0 }
   0x2   :  { %1621 = sst [smem:[#allocation19_spill]] %s1607_s2 }
   0x3   :  { %12 = sst [smem:[#allocation2]] %s1610_s5 }
   0x4   :  { %13 = sst [smem:[#allocation3]] %s1611_s6 }
   0x5   :  { %14 = vsyncpa [#allocation5], 0 }
   0x6   :  { %16 = vsyncpa [#allocation5 + $0x1], 0 }
   0x7   :  { %17 = vsyncpa [#allocation8], 0 }
   0x8   :  { %19 = vsyncpa [#allocation8 + $0x1], 0 }
   0x9   :  { %20 = vsyncpa [#allocation11], 0 }
   0xa   :  { %21 = vsyncpa [#allocation6], 0 }
   0xb   :  { %23 = vsyncpa [#allocation6 + $0x1], 0  ;;  %s1296_s28 = smov 0   ;;  %s1298_s29 = smov 0  }
   0xc   :  { %s1300_s30 = smov 0   ;;  %s1302_s8 = smov 0  }
   0xd LB: > { %s1317_s5 = sadd.s32 4294967295, %s1236_s8   ;;  %s868_s6 = sadd.s32 4294967294, %s1236_s8   ;;  %s1236_s8 = sphi %s1302_s8, %s1644_s8   ;;  %s1232_s30 = sphi %s1300_s30, %s1643_s30   ;;  %s1228_s29 = sphi %s1298_s29, %s1642_s29   ;;  %s1224_s28 = sphi %s1296_s28, %s1641_s28  }
   0xe   : > { %p49_p0 = scmp.ne.s32.totalorder %s1228_s29, %s1224_s28  ;;  %p1613_p1 = scmp.eq.s32.totalorder %s1317_s5, 0 }
   0xf   : > { %p210_p3 = scmp.eq.s32.totalorder %s868_s6, 1  ;;  %p869_p5 = scmp.ge.s32.totalorder %s1236_s8, 1 }
  0x10   : > { %p1326_p4 = por %p1613_p1, %p49_p0  ;;  %p217_p7 = scmp.lt.s32.totalorder %s1236_s8, 3 }
  0x11   : > { %p1331_p6 = por %p210_p3, %p49_p0  ;;  %s1238_s12 = smov [#allocation9]  }
  0x12   : > { %s1622_s9 = scalar_select %p1326_p4, 1, 0 }
  0x13   : > { %s1623_s10 = scalar_select %p1331_p6, 1, 0 }
  0x14   : > { %p1336_p8 = pnand %p869_p5, %p217_p7  ;;  %s229_s13 = sshll.u32 %s1238_s12, 4  ;;  %s1340_s13 = int_to_ptr.vmem [resolvable:$true] %s229_s13 }
  0x15   : > { %s1239_s15 = smov [#allocation10]   ;;  %s1626_s2 = sld [smem:[#allocation19_spill]] }
  0x16   : > { %p973_p9 = pneg %p1336_p8  ;;  %s245_s16 = sshll.u32 %s1239_s15, 4  ;;  %s1351_s16 = int_to_ptr.vmem [resolvable:$true] %s245_s16 }
  0x18   : > { %p1347_p11 = pnand %p973_p9, %p1613_p1 }
  0x1a   : > { %p1044_p13 = pneg %p1347_p11 }
  0x1b   : > { %s1042_s19 = scalar_lea.hbm %s1626_s2, 384 }
  0x1c   : > { %p1043_p12 = scmp.ne.s32.totalorder %s1626_s2, %s1042_s19  ;;  %p1049_p5 = scmp.lt.u32.totalorder %s1042_s19, %s1626_s2 }
  0x1e   : > { %p1045_p0 = pnand %p1044_p13, %p1043_p12 }
  0x20   : > { %p1046_p3 = pneg %p1045_p0 }
  0x22   : > { %p1051_p7 = pnand %p1049_p5, %p1046_p3 }
  0x24   : > { %1054 = shalt.err (!%p1051_p7)
}
  0x25   : > { %s1055_s24 = scalar_lea.vmem %s1340_s13, 384  ;;  %p1063_p2 = scmp.lt.s32.totalorder %s1340_s13, %s1340_s13 }
  0x26   : > { %p1056_p9 = scmp.ne.s32.totalorder %s1340_s13, %s1055_s24  ;;  %p1064_p12 = scmp.lt.s32.totalorder %s1055_s24, %s1055_s24 }
  0x28   : > { %p1058_p10 = pnand %p1056_p9, %p1044_p13  ;;  %p1065_p0 = por %p1064_p12, %p1063_p2 }
  0x2a   : > { %p1059_p1 = pneg %p1058_p10 }
  0x2c   : > { %p1066_p6 = pnand %p1065_p0, %p1059_p1 }
  0x2e   : > { %1069 = shalt.err (!%p1066_p6)
}
  0x2f   : > { %s1614_s25 = smov 128   ;;  %s1616_s26 = smov 8  }
  0x30   : > { %976 = dma.hbm_to_vmem [thread:$0]  (!%p1347_p11), %s1626_s2, 384, %s1340_s13, [#allocation8], %s1614_s25, %s1614_s25, %s1616_s26  }
  0x31   : > { %s1070_s17 = scalar_lea.hbm %s1609_s4, 512 }
  0x32   : > { %p1071_p1 = scmp.ne.s32.totalorder %s1609_s4, %s1070_s17  ;;  %p1077_p10 = scmp.lt.u32.totalorder %s1070_s17, %s1609_s4 }
  0x34   : > { %p1073_p2 = pnand %p1071_p1, %p1044_p13 }
  0x36   : > { %p1074_p6 = pneg %p1073_p2 }
  0x38   : > { %p1079_p3 = pnand %p1077_p10, %p1074_p6 }
  0x3a   : > { %1082 = shalt.err (!%p1079_p3)
}
  0x3b   : > { %s1083_s13 = scalar_lea.vmem %s1351_s16, 512  ;;  %p1091_p12 = scmp.lt.s32.totalorder %s1351_s16, %s1351_s16 }
  0x3c   : > { %p1084_p5 = scmp.ne.s32.totalorder %s1351_s16, %s1083_s13  ;;  %p1092_p0 = scmp.lt.s32.totalorder %s1083_s13, %s1083_s13 }
  0x3e   : > { %p1086_p7 = pnand %p1084_p5, %p1044_p13  ;;  %p1093_p1 = por %p1092_p0, %p1091_p12 }
  0x40   : > { %p1087_p9 = pneg %p1086_p7 }
  0x42   : > { %p1094_p2 = pnand %p1093_p1, %p1087_p9 }
  0x44   : > { %1097 = shalt.err (!%p1094_p2)
}
  0x45   : > { %979 = dma.hbm_to_vmem [thread:$0]  (!%p1347_p11), %s1609_s4, 512, %s1351_s16, [#allocation11], %s1614_s25, %s1614_s25, %s1616_s26  }
  0x46   : > { %s1412_s14 = sadd.s32 1, %s1236_s8   ;;  %s36_s24 = sadd.s32 1, %s1232_s30 }
  0x47   : > { %s33_s27 = ssub.s32 %s1236_s8, %s1412_s14  ;;  %p43_p13 = scmp.ne.s32.totalorder %s1232_s30, %s1228_s29 }
  0x48   : > { %p34_p6 = scmp.eq.s32.totalorder %s33_s27, 0  ;;  %p44_p10 = scmp.eq.s32.totalorder %s1236_s8, 0 }
  0x49   : > { %p1627_p3 = scmp.eq.s32.totalorder %s1317_s5, 1  ;;  %p993_p7 = scmp.lt.s32.totalorder %s1236_s8, 2 }
  0x4a   : > { %s1428_s12 = scalar_select %p34_p6, %s1232_s30, %s36_s24  }
  0x4b   : > { %p1422_p5 = por %p1627_p3, %p43_p13  ;;  %p45_p9 = por %p44_p10, %p43_p13 }
  0x4c   : > { %s265_s15 = sand.u32 1, %s1232_s30   ;;  %s900_s16 = sshll.u32 %s1236_s8, 8 }
  0x4d   : > { %s1628_s6 = scalar_select %p1422_p5, 1, 0 }
  0x4e   : > { %s873_s17 = sshll.u32 %s265_s15, 4  ;;  %s1629_s0 = sld [smem:[#allocation18_spill]] }
  0x4f   : > { %s269_s21 = scalar_lea.vmem [#allocation4], %s873_s17  ;;  %p1439_p11 = pnand %p993_p7, %p45_p9 }
  0x50   : > { %s276_s13 = sshll.u32 %s269_s21, 4  ;;  %s1446_s27 = scalar_lea.hbm %s1606_s1, %s900_s16  ;;  %s1437_s13 = int_to_ptr.vmem [resolvable:$true] %s276_s13 }
  0x51   : > { %s290_s18 = scalar_lea.vmem [#allocation7], %s873_s17  ;;  %s1450_s25 = scalar_lea.sflag [#allocation5], %s265_s15 }
  0x52   : > { %s1448_s19 = sshll.u32 %s290_s18, 4  ;;  %p1100_p0 = pneg %p1439_p11  ;;  %s1482_s19 = int_to_ptr.vmem [resolvable:$true] %s1448_s19 }
  0x54   : > { %s1435_s20 = scalar_lea.hbm %s1629_s0, %s900_s16  ;;  %s1103_s23 = scalar_lea.hbm %s1629_s0, 512 }
  0x55   : > { %s1098_s21 = scalar_lea.hbm %s1435_s20, 256  ;;  %p1104_p13 = scmp.lt.u32.totalorder %s1435_s20, %s1629_s0 }
  0x56   : > { %p1099_p12 = scmp.ne.s32.totalorder %s1435_s20, %s1098_s21  ;;  %p1105_p6 = scmp.lt.u32.totalorder %s1103_s23, %s1098_s21 }
  0x57   : > { %p1107_p3 = scmp.lt.u32.totalorder %s1098_s21, %s1435_s20 }
  0x58   : > { %p1101_p1 = pnand %p1100_p0, %p1099_p12  ;;  %p1106_p10 = por %p1105_p6, %p1104_p13 }
  0x5a   : > { %p1102_p2 = pneg %p1101_p1  ;;  %p1108_p7 = por %p1107_p3, %p1106_p10 }
  0x5c   : > { %p1109_p9 = pnand %p1108_p7, %p1102_p2 }
  0x5e   : > { %1112 = shalt.err (!%p1109_p9)
}
  0x5f   : > { %s1113_s15 = scalar_lea.vmem %s1437_s13, 256  ;;  %s1242_s2 = smov [#allocation4]  }
  0x60   : > { %p1114_p12 = scmp.ne.s32.totalorder %s1437_s13, %s1113_s15  ;;  %s1118_s26 = sshll.u32 %s1242_s2, 4  ;;  %s1119_s26 = int_to_ptr.vmem [resolvable:$false] %s1118_s26 }
  0x61   : > { %s1120_s17 = scalar_lea.vmem %s1119_s26, 512  ;;  %p1121_p4 = scmp.lt.s32.totalorder %s1437_s13, %s1119_s26 }
  0x62   : > { %p1116_p1 = pnand %p1114_p12, %p1100_p0  ;;  %p1122_p13 = scmp.lt.s32.totalorder %s1120_s17, %s1113_s15 }
  0x64   : > { %p1117_p5 = pneg %p1116_p1  ;;  %p1123_p6 = por %p1122_p13, %p1121_p4 }
  0x66   : > { %p1124_p10 = pnand %p1123_p6, %p1117_p5 }
  0x68   : > { %1127 = shalt.err (!%p1124_p10)
}
  0x69   : > { %s1631_s18 = smov 8   ;;  %s1632_s21 = smov 128  }
  0x6a   : > { %983 = dma.hbm_to_vmem [thread:$0]  (!%p1439_p11), %s1435_s20, 256, %s1437_s13, %s1450_s25, %s1632_s21, %s1632_s21, %s1631_s18  }
  0x6b   : > { %s286_s23 = sand.u32 1, %s1236_s8   ;;  %s1128_s16 = scalar_lea.hbm %s1446_s27, 256 }
  0x6c   : > { %s1485_s24 = scalar_lea.sflag [#allocation8], %s286_s23  ;;  %p1129_p4 = scmp.ne.s32.totalorder %s1446_s27, %s1128_s16 }
  0x6d   : > { %s1133_s26 = scalar_lea.hbm %s1606_s1, 512  ;;  %p1134_p3 = scmp.lt.u32.totalorder %s1446_s27, %s1606_s1 }
  0x6e   : > { %p1131_p5 = pnand %p1129_p4, %p1100_p0  ;;  %p1135_p7 = scmp.lt.u32.totalorder %s1133_s26, %s1128_s16 }
  0x6f   : > { %p1137_p12 = scmp.lt.u32.totalorder %s1128_s16, %s1446_s27 }
  0x70   : > { %p1132_p2 = pneg %p1131_p5  ;;  %p1136_p9 = por %p1135_p7, %p1134_p3 }
  0x72   : > { %p1138_p1 = por %p1137_p12, %p1136_p9 }
  0x74   : > { %p1139_p13 = pnand %p1138_p1, %p1132_p2 }
  0x76   : > { %1142 = shalt.err (!%p1139_p13)
}
  0x77   : > { %s1143_s25 = scalar_lea.vmem %s1482_s19, 256  ;;  %s1243_s20 = smov [#allocation7]  }
  0x78   : > { %p1144_p6 = scmp.ne.s32.totalorder %s1482_s19, %s1143_s25  ;;  %s1148_s13 = sshll.u32 %s1243_s20, 4  ;;  %s1149_s13 = int_to_ptr.vmem [resolvable:$false] %s1148_s13 }
  0x79   : > { %s1150_s0 = scalar_lea.vmem %s1149_s13, 512  ;;  %p1151_p5 = scmp.lt.s32.totalorder %s1482_s19, %s1149_s13 }
  0x7a   : > { %p1146_p10 = pnand %p1144_p6, %p1100_p0  ;;  %p1152_p3 = scmp.lt.s32.totalorder %s1150_s0, %s1143_s25 }
  0x7c   : > { %p1147_p4 = pneg %p1146_p10  ;;  %p1153_p7 = por %p1152_p3, %p1151_p5 }
  0x7e   : > { %p1154_p9 = pnand %p1153_p7, %p1147_p4 }
  0x80   : > { %1157 = shalt.err (!%p1154_p9)
}
  0x81   : > { %986 = dma.hbm_to_vmem [thread:$0]  (!%p1439_p11), %s1446_s27, 256, %s1482_s19, %s1485_s24, %s1632_s21, %s1632_s21, %s1631_s18  }
  0x82   : > { %309 = sbr.rel (%p1336_p8) target bundleno = 1244 (0x4dc), region = 48  ;;  %s1517_s23 = sand.u32 (!%p1336_p8), 1, %s1228_s29  }
  0x83   : > { %s880_s16 = sshll.u32 (!%p1336_p8), %s1517_s23, 4  ;;  %s312_s15 = scalar_lea.sflag (!%p1336_p8), [#allocation5], %s1517_s23 }
  0x84   : > { %s315_s2 = scalar_lea.vmem (!%p1336_p8), [#allocation4], %s880_s16  ;;  %p1633_p0 = scmp.ne.s32.totalorder (!%p1336_p8), %s1622_s9, 0 }
  0x89   : > { %1203 = dma.done.wait (%p1633_p0), %s312_s15, 256  }
  0x8a   : > { %1205 = vsyncadd (%p1633_p0), %s312_s15, 4294967040  ;;  %s320_s22 = sand.u32 1, %s1317_s5   ;;  %s324_s11 = scalar_lea.vmem [#allocation7], %s880_s16 }
  0x8b   : > { %s321_s27 = scalar_lea.sflag [#allocation8], %s320_s22 }
  0x8c   : > { %1207 = dma.done.wait (%p1633_p0), %s321_s27, 256  }
  0x8d   : > { %1209 = vsyncadd (%p1633_p0), %s321_s27, 4294967040  ;;  %p1634_p8 = scmp.eq.s32.totalorder %s1317_s5, 0 }
  0x8f   : > { %1211 = dma.done.wait (%p1634_p8), [#allocation8], 384   ;;  %p1635_p11 = pmov %p1634_p8 }
  0x90   : > { %p1636_p2 = pmov %p1634_p8 }
  0x91   : > { %1213 = vsyncadd (%p1635_p11), [#allocation8], 4294966912 }
  0x92   : > { %1215 = dma.done.wait (%p1636_p2), [#allocation11], 512   ;;  %p1637_p12 = pmov %p1636_p2 }
  0x93   : > { %vm382_vm0 = vcmask 195584   ;;  %v370_v0 = vld [vmem:[#allocation9] sm:$0xff]  ;;  %v371_v1 = vld [vmem:[#allocation9 + $0x8] sm:$0xff]  ;;  %v372_v4 = vld [vmem:[#allocation9 + $0x10] sm:$0xff]  ;;  %vm470_vm1 = vcmask 130048   ;;  %vm571_vm2 = vcmask 261120   ;;  %v674_v43 = vlaneseq }
  0x94   : > { %1217 = vsyncadd (%p1637_p12), [#allocation11], 4294966784  ;;  %v943_v2 = vpack.c.bf16 %v371_v1, %v370_v0  ;;  %v380_v3 = vld [vmem:[%s315_s2] sm:$0xff]  ;;  %v381_v5 = vld [vmem:[%s315_s2 + $0x8] sm:$0xff]  ;;  %v1244_v14 = vmov 0.0|0.0   ;;  %vm1245_vm4 = vmmov 0  }
  0x95   : > { %922 = vmatprep.mubr.msk.f32.mxu0 %vm382_vm0, %v380_v3  ;;  %v378_v6 = vld [vmem:[%s324_s11] sm:$0xff]  ;;  %v379_v10 = vld [vmem:[%s324_s11 + $0x8] sm:$0xff]  ;;  %951 = vmatprep.subr.bf16.mxu1 %v1244_v14  ;;  %vm953_vm3 = vmpackc.low %vm571_vm2, %vm571_vm2  ;;  %v1246_v18 = vmov 0.0   ;;  %s368_s9 = sld [smem:[#allocation2]]  ;;  %s1247_s21 = smov 96   ;;  %v675_v44 = vshrl.u32 %v674_v43, 7 }
  0x96   : > { %944 = vmatprep.subr.bf16.mxu0 %v943_v2  ;;  %v374_v11 = vld [vmem:[#allocation10] sm:$0xff]  ;;  %v375_v12 = vld [vmem:[#allocation10 + $0x8] sm:$0xff]  ;;  %v376_v15 = vld [vmem:[#allocation10 + $0x10] sm:$0xff]  ;;  %940 = vmatprep.mubr.msk.f32.mxu1 %vm1245_vm4, %v1246_v18  ;;  %s1248_s24 = smov 32   ;;  %s369_s26 = sld [smem:[#allocation3]]  ;;  %vm724_vm7 = vcmask 130112  }
  0x97   : > { %946 = vmatpush3.bf16.msra.mxu0 %v943_v2  ;;  %v952_v13 = vpack.c.bf16 %v375_v12, %v374_v11  ;;  %v377_v16 = vld [vmem:[#allocation10 + $0x18] sm:$0xff]  ;;  %v887_v19 = vld [vmem:[%s1608_s3] ss:$0 sm:$0xff]  ;;  %v676_v45 = vsub.s32 0, %v675_v44  ;;  %v714_v2 = vand.u32 127, %v674_v43  ;;  %s884_s17 = sshll.u32 %s1517_s23, 1 }
  0x98   : > { %920 = vmatprep.subr.mxu0 %v372_v4  ;;  %v956_v17 = vpack.c.bf16 %v377_v16, %v376_v15  ;;  %vm727_vm8 = vcmask 122880   ;;  %s367_s25 = scalar_lea.vmem [#allocation12], %s884_s17  ;;  %s897_s20 = sshll.u32 %s1317_s5, 5 }
  0x99   : > { %954 = vmatpush3.bf16.xpose.msk.msra.mxu1 %vm953_vm3, %v952_v13  ;;  %v719_v3 = vadd.s32 4294967288, %v714_v2  ;;  %s756_s13 = sshll.u32 %s367_s25, 4  ;;  %s1560_s15 = scalar_lea.hbm %s1612_s7, %s897_s20  ;;  %s1562_s13 = int_to_ptr.vmem [resolvable:$true] %s756_s13 }
  0x9a   : > { %955 = vmatprep.subr.bf16.mxu1 %v1244_v14  ;;  %s743_s2 = scalar_lea.sflag [#allocation6], %s1517_s23  ;;  %s1158_s22 = scalar_lea.vmem %s1562_s13, 32 }
  0x9b   : > { %921 = vmatpush3.msra.mxu0 %v372_v4  ;;  %v554_v21 = vstv %s368_s9  ;;  %p1159_p1 = scmp.ne.s32.totalorder %s1562_s13, %s1158_s22  ;;  %p1638_p13 = scmp.ne.s32.totalorder %s1628_s6, 0 }
  0x9c   : > { %923 = vmatmul.mubr.msk.f32.vlgmr.msra.gmra.mrb[0].mxu0 %vm382_vm0, %v381_v5  ;;  %v686_v4 = vstv %s369_s26  ;;  %s1249_s5 = smov [#allocation12]  }
  0x9d   : > { %929 = vmatprep.mubr.msk.f32.mxu0 %vm470_vm1, %v378_v6  ;;  %v722_v6 = vsub.s32 %v719_v3, %v675_v44  ;;  %p1160_p6 = pnand %p1159_p1, %p1638_p13  ;;  %s1162_s27 = sshll.u32 %s1249_s5, 4  ;;  %s1163_s27 = int_to_ptr.vmem [resolvable:$false] %s1162_s27 }
  0x9e   : > { %s1164_s11 = scalar_lea.vmem %s1163_s27, 64  ;;  %p1165_p4 = scmp.lt.s32.totalorder %s1562_s13, %s1163_s27 }
  0x9f   : > { %p1161_p10 = pneg %p1160_p6  ;;  %p1166_p5 = scmp.lt.s32.totalorder %s1164_s11, %s1158_s22 }
  0xa1   : > { %958 = vmatpush3.bf16.xpose.msk.msra.mxu1 %vm953_vm3, %v956_v17  ;;  %p1167_p3 = por %p1166_p5, %p1165_p4 }
  0xa3   : > { %p1168_p7 = pnand %p1167_p3, %p1161_p10 }
 0x16f   : > { %v924_v7 = vpop.f32.mrb[0].mxu0 }
 0x170   : > { %v455_v8 = vpop.f32.mrb[1].mxu0 }
 0x171   : > { %v947_v9 = vpack.c.bf16 %v924_v7, %v455_v8  ;;  %v717_v8 = vsub.s32 %v714_v2, %v675_v44 }
 0x173   : > { %948 = vmatprep.subr.bf16.mxu0 %v947_v9 }
 0x174   : > { %950 = vmatpush3.bf16.msra.mxu0 %v947_v9 }
 0x177   : > { %930 = vmatmul.mubr.msk.f32.vlgmr.msra.gmra.mrb[2].mxu0 %vm470_vm1, %v379_v10 }
 0x24a   : > { %v931_v20 = vpop.f32.mrb[2].mxu0 }
 0x24b   : > { %v549_v22 = vadd.f32 %v931_v20, %v887_v19  ;;  %v543_v23 = vpop.f32.mrb[3].mxu0 }
 0x24c   : > { %v544_v24 = vadd.f32 %v887_v19, %v543_v23 }
 0x24d   : > { %vm553_vm5 = vcmp.gt.f32.partialorder %v549_v22, 0.0  ;;  %v556_v25 = vmul.f32 %v554_v21, %v549_v22 }
 0x24e   : > { %vm552_vm6 = vcmp.gt.f32.partialorder %v544_v24, 0.0  ;;  %v555_v26 = vmul.f32 %v554_v21, %v544_v24 }
 0x24f   : > { %v558_v27 = vsel %vm553_vm5, %v549_v22, %v556_v25 }
 0x250   : > { %v557_v28 = vsel %vm552_vm6, %v544_v24, %v555_v26  ;;  %v573_v29 = vsel %vm571_vm2, %v558_v27, 0.0 }
 0x251   : > { %561 = vrot.lane.b32.xlu0 %v557_v28, %s1247_s21  ;;  %v572_v30 = vsel %vm571_vm2, %v557_v28, 0.0 }
 0x252   : > { %v574_v31 = vadd.f32 %v573_v29, %v572_v30 }
 0x254   : > { %v575_v32 = vrot.slane %v574_v31, 4 }
 0x255   : > { %563 = vrot.lane.b32.xlu0 %v558_v27, %s1247_s21 }
 0x256   : > { %v576_v33 = vadd.f32 %v575_v32, %v574_v31 }
 0x258   : > { %v577_v34 = vrot.slane %v576_v33, 2 }
 0x25a   : > { %v578_v35 = vadd.f32 %v577_v34, %v576_v33 }
 0x25c   : > { %v579_v36 = vrot.slane %v578_v35, 1 }
 0x25e   : > { %v580_v37 = vadd.f32 %v579_v36, %v578_v35 }
 0x260   : > { %v890_v38 = vmul.f32 -0.0625, %v580_v37 }
 0x262   : > { %v584_v39 = vmul.f32 1.442695, %v890_v38 }
 0x264   : > { %1038 = vpow2.f32 %v584_v39 }
 0x26e   : > { %v1039_v40 = vpop.eup %1038 }
 0x26f   : > { %v586_v41 = vadd.f32 1.0, %v1039_v40 }
 0x271   : > { %1040 = vrcp.f32 %v586_v41 }
 0x27b   : > { %v1041_v42 = vpop.eup %1040 }
 0x27c   : > { %941 = vmatmul.mubr.msk.f32.vlgmr.msra.gmra.mrb[0].mxu1 %vm571_vm2, %v1041_v42 }
 0x2c3   : > { %v562_v49 = vpop.permute.xlu0 %561 }
 0x2c4   : > { %v567_v51 = vadd.f32 %v562_v49, %v557_v28 }
 0x2c6   : > { %v569_v53 = vmul.f32 0.5, %v567_v51 }
 0x2c7   : > { %v564_v50 = vpop.permute.xlu0 %563 }
 0x2c8   : > { %v568_v52 = vadd.f32 %v564_v50, %v558_v27 }
 0x2ca   : > { %v570_v54 = vmul.f32 0.5, %v568_v52 }
 0x34f   : > { %v670_v46 = vpop.f32.mrb[0].mxu1 }
 0x350   : > { %v677_v47 = vrot.slane %v670_v46, %v676_v45  ;;  %v942_v48 = vpop.f32.mrb[1].mxu1 }
 0x352   : > { %690 = vrot.lane.b32.xlu1 %v677_v47, %s1248_s24  ;;  %v679_v58 = vmul.f32 %v677_v47, %v558_v27  ;;  %v678_v60 = vmul.f32 %v677_v47, %v557_v28 }
 0x354   : > { %v683_v59 = vsel %vm571_vm2, %v679_v58, 0.0  ;;  %v680_v61 = vsel %vm571_vm2, %v678_v60, 0.0 }
 0x3c4   : > { %v691_v55 = vpop.permute.xlu1 %690 }
 0x3c5   : > { %v693_v56 = vmul.f32 %v691_v55, %v569_v53  ;;  %v694_v57 = vmul.f32 %v691_v55, %v570_v54 }
 0x3c7   : > { %699 = vrot.lane.b32.xlu0 %v694_v57, %s1247_s21  ;;  %697 = vrot.lane.b32.xlu1 %v693_v56, %s1247_s21 }
 0x3e6   : > { %684 = vadd.xlane.f32.xlu0 %v683_v59 }
 0x3eb   : > { %681 = vadd.xlane.f32.xlu1 %v680_v61 }
 0x439   : > { %v700_v62 = vpop.permute.xlu0 %699  ;;  %v698_v63 = vpop.permute.xlu1 %697 }
 0x43a   : > { %v703_v0 = vsel %vm571_vm2, %v698_v63, 0.0  ;;  %v706_v1 = vsel %vm571_vm2, %v700_v62, 0.0 }
 0x43b   : > { %704 = vadd.xlane.f32.xlu0 %v703_v0  ;;  %707 = vadd.xlane.f32.xlu1 %v706_v1 }
 0x473   : > { %v685_v5 = vpop.xlane.xlu0 %684 }
 0x474   : > { %v688_v7 = vadd.f32 %v686_v4, %v685_v5 }
 0x476   : > { %v723_v11 = vrot.slane %v688_v7, %v722_v6 }
 0x478   : > { %v682_v9 = vpop.xlane.xlu1 %681 }
 0x479   : > { %v687_v10 = vadd.f32 %v686_v4, %v682_v9 }
 0x47b   : > { %v718_v12 = vrot.slane %v687_v10, %v717_v8 }
 0x47d   : > { %v725_v13 = vsel %vm724_vm7, %v723_v11, %v718_v12 }
 0x47e   : > { %728 = vst.msk [vmem:[%s367_s25] sm:$0x1] %vm727_vm8, %v725_v13 }
 0x4c8   : > { %v705_v14 = vpop.xlane.xlu0 %704  ;;  %v708_v15 = vpop.xlane.xlu1 %707 }
 0x4c9   : > { %v709_v16 = vadd.f32 %v705_v14, %v686_v4  ;;  %v710_v17 = vadd.f32 %v708_v15, %v686_v4 }
 0x4cb   : > { %v734_v18 = vrot.slane %v709_v16, %v717_v8  ;;  %v738_v19 = vrot.slane %v710_v17, %v722_v6 }
 0x4cd   : > { %v739_v20 = vsel %vm724_vm7, %v738_v19, %v734_v18 }
 0x4ce   : > { %741 = vst.msk [vmem:[%s367_s25 + $0x1] sm:$0x1] %vm727_vm8, %v739_v20 }
 0x4cf   : > { %1171 = shalt.err (!%p1168_p7)
}
 0x4d0   : > { %s1172_s23 = scalar_lea.hbm %s1560_s15, 32  ;;  %s1176_s18 = scalar_lea.hbm %s1612_s7, 64 }
 0x4d1   : > { %p1173_p9 = scmp.ne.s32.totalorder %s1560_s15, %s1172_s23  ;;  %p1177_p11 = scmp.lt.u32.totalorder %s1560_s15, %s1612_s7 }
 0x4d2   : > { %p1178_p2 = scmp.lt.u32.totalorder %s1176_s18, %s1172_s23  ;;  %p1180_p1 = scmp.lt.u32.totalorder %s1172_s23, %s1560_s15 }
 0x4d3   : > { %p1174_p0 = pnand %p1173_p9, %p1638_p13 }
 0x4d4   : > { %p1179_p12 = por %p1178_p2, %p1177_p11 }
 0x4d5   : > { %p1175_p8 = pneg %p1174_p0 }
 0x4d6   : > { %p1181_p6 = por %p1180_p1, %p1179_p12 }
 0x4d8   : > { %p1182_p10 = pnand %p1181_p6, %p1175_p8 }
 0x4da   : > { %1185 = shalt.err (!%p1182_p10)
}
 0x4db   : > { %971 = dma.vmem_to_hbm [thread:$0]  (%p1638_p13), %s1562_s13, 32, %s1560_s15, %s743_s2  }
 0x4dc PF: > { %s768_s26 = sand.u32 1, %s1224_s28   ;;  %p1639_p4 = scmp.ne.s32.totalorder %s1623_s10, 0 }
 0x4dd   : > { %p1640_p5 = scmp.ge.s32.totalorder %s1236_s8, 2  ;;  %s769_s17 = scalar_lea.sflag [#allocation6], %s768_s26 }
 0x4df   : > { %p988_p3 = pnand %p1640_p5, %p1639_p4 }
 0x4e1   : > { %1219 = dma.done.wait (!%p988_p3), %s769_s17, 32  }
 0x4e2   : > { %1221 = vsyncadd (!%p988_p3), %s769_s17, 4294967264  ;;  %p26_p7 = scmp.ge.s32.totalorder %s1412_s14, 4   ;;  %s1641_s28 = smov %s1228_s29 }
 0x4e3   : > { %s1642_s29 = smov %s1232_s30  ;;  %s1643_s30 = smov %s1428_s12 }
 0x4e4   : > { %s1644_s8 = smov %s1412_s14  ;;  %28 = sbr.rel (!%p26_p7) target bundleno = 13 (0xd), region = 114 }
 0x4eb   :  { %774 = vsyncpa [#allocation5], 1 }
 0x4ec   :  { %776 = vsyncpa [#allocation5 + $0x1], 1 }
 0x4ed   :  { %777 = vsyncpa [#allocation8], 1 }
 0x4ee   :  { %779 = vsyncpa [#allocation8 + $0x1], 1 }
 0x4ef   :  { %780 = vsyncpa [#allocation11], 1 }
 0x4f0   :  { %781 = vsyncpa [#allocation6], 1 }
 0x4f1   :  { %783 = vsyncpa [#allocation6 + $0x1], 1 }

</bundles_post_ra>
